<compile_context>
chip_gen: v6e
topology: v6e:2x2x1
jax: 0.10.0
libtpu: 0.0.40
codegen_flags: <defaults>
</compile_context>

<pallas_src>
import jax
import jax.numpy as jnp
from jax.experimental import pallas as pl
from jax.experimental.pallas import tpu as pltpu

LANES = 128
SUBLANES = 8
OUT_FEATURES = 7


# -----------------------------------------------------------------------------
# Kernel
# -----------------------------------------------------------------------------
def gru_kernel(x_ref, wih_ref, whh_ref, bias_ref, wfc_ref, out_ref):
    """Single-invocation GRU recurrence + FC head.

    x_ref    : (T*BP, I)  time-major input, batch padded to BP (multiple of 8)
    wih_ref  : (I, 128)   [W_ir^T | W_iz^T | W_in^T | 0]
    whh_ref  : (H, 128)   [W_hr^T | W_hz^T | W_hn^T | 0]
    bias_ref : (8, 128)   row0 = [b_r | b_z | b_in | 0]  (r/z biases = b_ih+b_hh)
                          row1 = [ 0  |  0  | b_hn | 0]  (n-gate hh bias, r-gated)
                          row2 = [b_fc padded to 128]
    wfc_ref  : (H, 128)   [W_fc^T | 0]
    out_ref  : (BP, 128)  lane-dense padded output (cols 0:7 valid)
    """
    H = whh_ref.shape[0]
    BP = out_ref.shape[0]
    T = x_ref.shape[0] // BP

    # ---- Hoisted, fused input projection for all gates / all timesteps:
    #      one MXU op + one broadcast bias add (lanes 96:128 stay zero).
    gi = (jnp.dot(x_ref[...], wih_ref[...], preferred_element_type=jnp.float32)
          + bias_ref[0:1, :])

    whh = whh_ref[...]
    bhn_row = bias_ref[1:2, :]          # b_hn sits at lanes [2H:3H], zero elsewhere

    # ---- Serial recurrence: ONE fused (BP,H)@(H,128) matmul per step,
    #      fully static unroll (T is small).
    h = jnp.zeros((BP, H), jnp.float32)
    for t in range(T):
        gi_t = gi[t * BP:(t + 1) * BP, :]                       # aligned vreg pick
        gh = jnp.dot(h, whh, preferred_element_type=jnp.float32) + bhn_row
        r = jax.nn.sigmoid(gi_t[:, 0:H] + gh[:, 0:H])
        z = jax.nn.sigmoid(gi_t[:, H:2 * H] + gh[:, H:2 * H])
        n = jnp.tanh(gi_t[:, 2 * H:3 * H] + r * gh[:, 2 * H:3 * H])
        h = (1.0 - z) * n + z * h

    # ---- FC head on the last hidden state (lane-dense padded store).
    out_ref[...] = (jnp.dot(h, wfc_ref[...], preferred_element_type=jnp.float32)
                    + bias_ref[2:3, :]).astype(out_ref.dtype)


# -----------------------------------------------------------------------------
# One-time parameter packing (hoisted out of the per-call path)
# -----------------------------------------------------------------------------
def prepare_params(params):
    """Repack PyTorch-layout GRU/Linear params into kernel-ready slabs."""
    w_ih, w_hh, b_ih, b_hh, w_fc, b_fc = params
    H = w_hh.shape[1]
    I = w_ih.shape[1]
    assert 3 * H <= LANES, "fused-gate packing requires 3*hidden_size <= 128"

    # Packed input weights (I, 128): [W_ir^T | W_iz^T | W_in^T | 0]
    wih_packed = jnp.zeros((I, LANES), jnp.float32)
    wih_packed = wih_packed.at[:, 0:H].set(w_ih[0:H].T)
    wih_packed = wih_packed.at[:, H:2 * H].set(w_ih[H:2 * H].T)
    wih_packed = wih_packed.at[:, 2 * H:3 * H].set(w_ih[2 * H:3 * H].T)

    # Packed hidden weights (H, 128): [W_hr^T | W_hz^T | W_hn^T | 0]
    whh_packed = jnp.zeros((H, LANES), jnp.float32)
    whh_packed = whh_packed.at[:, 0:H].set(w_hh[0:H].T)
    whh_packed = whh_packed.at[:, H:2 * H].set(w_hh[H:2 * H].T)
    whh_packed = whh_packed.at[:, 2 * H:3 * H].set(w_hh[2 * H:3 * H].T)

    # Bias slab (8, 128).  r/z gates take folded b_ih+b_hh; n gate keeps b_in
    # in the hoisted projection and b_hn separate (it is multiplied by r).
    bias_slab = jnp.zeros((SUBLANES, LANES), jnp.float32)
    bias_slab = bias_slab.at[0, 0:H].set(b_ih[0:H] + b_hh[0:H])
    bias_slab = bias_slab.at[0, H:2 * H].set(b_ih[H:2 * H] + b_hh[H:2 * H])
    bias_slab = bias_slab.at[0, 2 * H:3 * H].set(b_ih[2 * H:3 * H])
    bias_slab = bias_slab.at[1, 2 * H:3 * H].set(b_hh[2 * H:3 * H])
    bias_slab = bias_slab.at[2, 0:OUT_FEATURES].set(b_fc)

    # Lane-dense padded FC head (H, 128).
    wfc_pad = jnp.zeros((H, LANES), jnp.float32).at[:, 0:OUT_FEATURES].set(w_fc.T)

    return wih_packed, whh_packed, bias_slab, wfc_pad, H


# -----------------------------------------------------------------------------
# Per-call wrapper
# -----------------------------------------------------------------------------
def gru_forward(x_time, kernel_params):
    """x_time: (B, T, I) float32.  Returns (B, 7)."""
    wih_packed, whh_packed, bias_slab, wfc_pad, H = kernel_params
    B, T, I = x_time.shape
    BP = ((B + SUBLANES - 1) // SUBLANES) * SUBLANES   # pad batch to 8-sublane tile

    # Time-major, batch padded with zero rows, flattened: row t*BP + b.
    x_tm = jnp.transpose(x_time, (1, 0, 2))            # (T, B, I)
    x_pad = jnp.zeros((T, BP, I), jnp.float32).at[:, :B, :].set(x_tm)
    x_flat = x_pad.reshape(T * BP, I)

    vmem = pl.BlockSpec(memory_space=pltpu.MemorySpace.VMEM)

    out = pl.pallas_call(
        gru_kernel,
        out_shape=jax.ShapeDtypeStruct((BP, LANES), jnp.float32),
        in_specs=[vmem] * 5,
        out_specs=vmem,
    )(x_flat, wih_packed, whh_packed, bias_slab, wfc_pad)

    # Drop padded batch rows and padded lanes before the final view(-1, 7).
    return out[:B, :OUT_FEATURES].reshape(-1, OUT_FEATURES)


# -----------------------------------------------------------------------------
# Init + pure-JAX reference (PyTorch GRU semantics) for correctness check
# -----------------------------------------------------------------------------
def init_params(key, input_size, hidden_size):
    """Deterministic init mimicking PyTorch uniform(-1/sqrt(H), 1/sqrt(H))."""
    k = 1.0 / jnp.sqrt(jnp.float32(hidden_size))
    keys = jax.random.split(key, 6)
    w_ih = jax.random.uniform(keys[0], (3 * hidden_size, input_size), jnp.float32, -k, k)
    w_hh = jax.random.uniform(keys[1], (3 * hidden_size, hidden_size), jnp.float32, -k, k)
    b_ih = jax.random.uniform(keys[2], (3 * hidden_size,), jnp.float32, -k, k)
    b_hh = jax.random.uniform(keys[3], (3 * hidden_size,), jnp.float32, -k, k)
    w_fc = jax.random.uniform(keys[4], (OUT_FEATURES, hidden_size), jnp.float32, -k, k)
    b_fc = jax.random.uniform(keys[5], (OUT_FEATURES,), jnp.float32, -k, k)
    return w_ih, w_hh, b_ih, b_hh, w_fc, b_fc


def gru_reference(x_time, params):
    w_ih, w_hh, b_ih, b_hh, w_fc, b_fc = params
    B, T, I = x_time.shape
    H = w_hh.shape[1]

    def step(h, x_t):
        gi = x_t @ w_ih.T + b_ih
        gh = h @ w_hh.T + b_hh
        i_r, i_z, i_n = gi[:, :H], gi[:, H:2 * H], gi[:, 2 * H:]
        h_r, h_z, h_n = gh[:, :H], gh[:, H:2 * H], gh[:, 2 * H:]
        r = jax.nn.sigmoid(i_r + h_r)
        z = jax.nn.sigmoid(i_z + h_z)
        n = jnp.tanh(i_n + r * h_n)
        return (1.0 - z) * n + z * h, None

    h0 = jnp.zeros((B, H), jnp.float32)
    h_last, _ = jax.lax.scan(step, h0, jnp.transpose(x_time, (1, 0, 2)))
    return (h_last @ w_fc.T + b_fc).reshape(-1, OUT_FEATURES)


if __name__ == "__main__":
    batch, seq, input_size, hidden_size, no_time_size = 2, 8, 4, 32, 5

    key = jax.random.PRNGKey(0)
    k_x, k_nt, k_p = jax.random.split(key, 3)
    x_time = jax.random.normal(k_x, (batch, seq, input_size), jnp.float32)
    x_no_time = jax.random.normal(k_nt, (batch, no_time_size), jnp.float32)  # unused by forward (as in torch)

    params = init_params(k_p, input_size, hidden_size)
    kernel_params = prepare_params(params)      # one-time packing, off the hot path

    out_kernel = gru_forward(x_time, kernel_params)
    jax.block_until_ready(out_kernel)

    out_ref = gru_reference(x_time, params)
    assert out_kernel.shape == (batch, OUT_FEATURES), out_kernel.shape
    max_err = jnp.max(jnp.abs(out_kernel - out_ref))
    assert jnp.allclose(out_kernel, out_ref, atol=2e-5, rtol=2e-5), max_err

    print("KERNEL_OK")
</pallas_src>

<mosaic_0001>
module attributes {stable_mosaic.version = 11 : i64} {
  func.func @gru_kernel(%arg0: memref<64x4xf32, #tpu.memory_space<vmem>>, %arg1: memref<4x128xf32, #tpu.memory_space<vmem>>, %arg2: memref<32x128xf32, #tpu.memory_space<vmem>>, %arg3: memref<8x128xf32, #tpu.memory_space<vmem>>, %arg4: memref<32x128xf32, #tpu.memory_space<vmem>>, %arg5: memref<8x128xf32, #tpu.memory_space<vmem>>) attributes {dimension_semantics = [], scalar_prefetch = 0 : i64, scratch_operands = 0 : i64, tpu.core_type = #tpu.core_type<tc>} {
    %c0 = arith.constant 0 : index
    %c0_0 = arith.constant 0 : index
    %0 = vector.load %arg0[%c0, %c0_0] : memref<64x4xf32, #tpu.memory_space<vmem>>, vector<64x4xf32>
    %c0_1 = arith.constant 0 : index
    %c0_2 = arith.constant 0 : index
    %1 = vector.load %arg1[%c0_1, %c0_2] : memref<4x128xf32, #tpu.memory_space<vmem>>, vector<4x128xf32>
    %cst = arith.constant dense<0.000000e+00> : vector<64x128xf32>
    %2 = tpu.matmul %0, %1, %cst {dimension_numbers = #tpu.dot_dimension_numbers<[1], [0], [0], [1], [0, 0, 1, 1], [], []>} : vector<64x4xf32>, vector<4x128xf32>, vector<64x128xf32> -> vector<64x128xf32>
    %c0_3 = arith.constant 0 : index
    %c0_4 = arith.constant 0 : index
    %3 = vector.load %arg3[%c0_3, %c0_4] : memref<8x128xf32, #tpu.memory_space<vmem>>, vector<1x128xf32>
    %4 = vector.broadcast %3 : vector<1x128xf32> to vector<64x128xf32>
    %5 = arith.addf %2, %4 : vector<64x128xf32>
    %c0_5 = arith.constant 0 : index
    %c0_6 = arith.constant 0 : index
    %6 = vector.load %arg2[%c0_5, %c0_6] : memref<32x128xf32, #tpu.memory_space<vmem>>, vector<32x128xf32>
    %c1 = arith.constant 1 : index
    %c0_7 = arith.constant 0 : index
    %7 = vector.load %arg3[%c1, %c0_7] : memref<8x128xf32, #tpu.memory_space<vmem>>, vector<1x128xf32>
    %cst_8 = arith.constant 0.000000e+00 : f32
    %8 = vector.broadcast %cst_8 : f32 to vector<8x32xf32>
    %9 = vector.extract_strided_slice %5 {offsets = [0, 0], sizes = [8, 128], strides = [1, 1]} : vector<64x128xf32> to vector<8x128xf32>
    %cst_9 = arith.constant dense<0.000000e+00> : vector<8x128xf32>
    %10 = tpu.matmul %8, %6, %cst_9 {dimension_numbers = #tpu.dot_dimension_numbers<[1], [0], [0], [1], [0, 0, 1, 1], [], []>} : vector<8x32xf32>, vector<32x128xf32>, vector<8x128xf32> -> vector<8x128xf32>
    %11 = vector.broadcast %7 : vector<1x128xf32> to vector<8x128xf32>
    %12 = arith.addf %10, %11 : vector<8x128xf32>
    %13 = vector.extract_strided_slice %9 {offsets = [0, 0], sizes = [8, 32], strides = [1, 1]} : vector<8x128xf32> to vector<8x32xf32>
    %14 = vector.extract_strided_slice %12 {offsets = [0, 0], sizes = [8, 32], strides = [1, 1]} : vector<8x128xf32> to vector<8x32xf32>
    %15 = arith.addf %13, %14 : vector<8x32xf32>
    %16 = arith.negf %15 : vector<8x32xf32>
    %17 = math.exp %16 : vector<8x32xf32>
    %cst_10 = arith.constant 1.000000e+00 : f32
    %18 = vector.broadcast %cst_10 : f32 to vector<8x32xf32>
    %19 = arith.addf %18, %17 : vector<8x32xf32>
    %20 = arith.divf %18, %19 : vector<8x32xf32>
    %21 = vector.extract_strided_slice %9 {offsets = [0, 32], sizes = [8, 32], strides = [1, 1]} : vector<8x128xf32> to vector<8x32xf32>
    %22 = vector.extract_strided_slice %12 {offsets = [0, 32], sizes = [8, 32], strides = [1, 1]} : vector<8x128xf32> to vector<8x32xf32>
    %23 = arith.addf %21, %22 : vector<8x32xf32>
    %24 = arith.negf %23 : vector<8x32xf32>
    %25 = math.exp %24 : vector<8x32xf32>
    %cst_11 = arith.constant 1.000000e+00 : f32
    %26 = vector.broadcast %cst_11 : f32 to vector<8x32xf32>
    %27 = arith.addf %26, %25 : vector<8x32xf32>
    %28 = arith.divf %26, %27 : vector<8x32xf32>
    %29 = vector.extract_strided_slice %9 {offsets = [0, 64], sizes = [8, 32], strides = [1, 1]} : vector<8x128xf32> to vector<8x32xf32>
    %30 = vector.extract_strided_slice %12 {offsets = [0, 64], sizes = [8, 32], strides = [1, 1]} : vector<8x128xf32> to vector<8x32xf32>
    %31 = arith.mulf %20, %30 : vector<8x32xf32>
    %32 = arith.addf %29, %31 : vector<8x32xf32>
    %33 = math.tanh %32 : vector<8x32xf32>
    %cst_12 = arith.constant 1.000000e+00 : f32
    %34 = vector.broadcast %cst_12 : f32 to vector<8x32xf32>
    %35 = arith.subf %34, %28 : vector<8x32xf32>
    %36 = arith.mulf %35, %33 : vector<8x32xf32>
    %37 = arith.mulf %28, %8 : vector<8x32xf32>
    %38 = arith.addf %36, %37 : vector<8x32xf32>
    %39 = vector.extract_strided_slice %5 {offsets = [8, 0], sizes = [8, 128], strides = [1, 1]} : vector<64x128xf32> to vector<8x128xf32>
    %cst_13 = arith.constant dense<0.000000e+00> : vector<8x128xf32>
    %40 = tpu.matmul %38, %6, %cst_13 {dimension_numbers = #tpu.dot_dimension_numbers<[1], [0], [0], [1], [0, 0, 1, 1], [], []>} : vector<8x32xf32>, vector<32x128xf32>, vector<8x128xf32> -> vector<8x128xf32>
    %41 = vector.broadcast %7 : vector<1x128xf32> to vector<8x128xf32>
    %42 = arith.addf %40, %41 : vector<8x128xf32>
    %43 = vector.extract_strided_slice %39 {offsets = [0, 0], sizes = [8, 32], strides = [1, 1]} : vector<8x128xf32> to vector<8x32xf32>
    %44 = vector.extract_strided_slice %42 {offsets = [0, 0], sizes = [8, 32], strides = [1, 1]} : vector<8x128xf32> to vector<8x32xf32>
    %45 = arith.addf %43, %44 : vector<8x32xf32>
    %46 = arith.negf %45 : vector<8x32xf32>
    %47 = math.exp %46 : vector<8x32xf32>
    %cst_14 = arith.constant 1.000000e+00 : f32
    %48 = vector.broadcast %cst_14 : f32 to vector<8x32xf32>
    %49 = arith.addf %48, %47 : vector<8x32xf32>
    %50 = arith.divf %48, %49 : vector<8x32xf32>
    %51 = vector.extract_strided_slice %39 {offsets = [0, 32], sizes = [8, 32], strides = [1, 1]} : vector<8x128xf32> to vector<8x32xf32>
    %52 = vector.extract_strided_slice %42 {offsets = [0, 32], sizes = [8, 32], strides = [1, 1]} : vector<8x128xf32> to vector<8x32xf32>
    %53 = arith.addf %51, %52 : vector<8x32xf32>
    %54 = arith.negf %53 : vector<8x32xf32>
    %55 = math.exp %54 : vector<8x32xf32>
    %cst_15 = arith.constant 1.000000e+00 : f32
    %56 = vector.broadcast %cst_15 : f32 to vector<8x32xf32>
    %57 = arith.addf %56, %55 : vector<8x32xf32>
    %58 = arith.divf %56, %57 : vector<8x32xf32>
    %59 = vector.extract_strided_slice %39 {offsets = [0, 64], sizes = [8, 32], strides = [1, 1]} : vector<8x128xf32> to vector<8x32xf32>
    %60 = vector.extract_strided_slice %42 {offsets = [0, 64], sizes = [8, 32], strides = [1, 1]} : vector<8x128xf32> to vector<8x32xf32>
    %61 = arith.mulf %50, %60 : vector<8x32xf32>
    %62 = arith.addf %59, %61 : vector<8x32xf32>
    %63 = math.tanh %62 : vector<8x32xf32>
    %cst_16 = arith.constant 1.000000e+00 : f32
    %64 = vector.broadcast %cst_16 : f32 to vector<8x32xf32>
    %65 = arith.subf %64, %58 : vector<8x32xf32>
    %66 = arith.mulf %65, %63 : vector<8x32xf32>
    %67 = arith.mulf %58, %38 : vector<8x32xf32>
    %68 = arith.addf %66, %67 : vector<8x32xf32>
    %69 = vector.extract_strided_slice %5 {offsets = [16, 0], sizes = [8, 128], strides = [1, 1]} : vector<64x128xf32> to vector<8x128xf32>
    %cst_17 = arith.constant dense<0.000000e+00> : vector<8x128xf32>
    %70 = tpu.matmul %68, %6, %cst_17 {dimension_numbers = #tpu.dot_dimension_numbers<[1], [0], [0], [1], [0, 0, 1, 1], [], []>} : vector<8x32xf32>, vector<32x128xf32>, vector<8x128xf32> -> vector<8x128xf32>
    %71 = vector.broadcast %7 : vector<1x128xf32> to vector<8x128xf32>
    %72 = arith.addf %70, %71 : vector<8x128xf32>
    %73 = vector.extract_strided_slice %69 {offsets = [0, 0], sizes = [8, 32], strides = [1, 1]} : vector<8x128xf32> to vector<8x32xf32>
    %74 = vector.extract_strided_slice %72 {offsets = [0, 0], sizes = [8, 32], strides = [1, 1]} : vector<8x128xf32> to vector<8x32xf32>
    %75 = arith.addf %73, %74 : vector<8x32xf32>
    %76 = arith.negf %75 : vector<8x32xf32>
    %77 = math.exp %76 : vector<8x32xf32>
    %cst_18 = arith.constant 1.000000e+00 : f32
    %78 = vector.broadcast %cst_18 : f32 to vector<8x32xf32>
    %79 = arith.addf %78, %77 : vector<8x32xf32>
    %80 = arith.divf %78, %79 : vector<8x32xf32>
    %81 = vector.extract_strided_slice %69 {offsets = [0, 32], sizes = [8, 32], strides = [1, 1]} : vector<8x128xf32> to vector<8x32xf32>
    %82 = vector.extract_strided_slice %72 {offsets = [0, 32], sizes = [8, 32], strides = [1, 1]} : vector<8x128xf32> to vector<8x32xf32>
    %83 = arith.addf %81, %82 : vector<8x32xf32>
    %84 = arith.negf %83 : vector<8x32xf32>
    %85 = math.exp %84 : vector<8x32xf32>
    %cst_19 = arith.constant 1.000000e+00 : f32
    %86 = vector.broadcast %cst_19 : f32 to vector<8x32xf32>
    %87 = arith.addf %86, %85 : vector<8x32xf32>
    %88 = arith.divf %86, %87 : vector<8x32xf32>
    %89 = vector.extract_strided_slice %69 {offsets = [0, 64], sizes = [8, 32], strides = [1, 1]} : vector<8x128xf32> to vector<8x32xf32>
    %90 = vector.extract_strided_slice %72 {offsets = [0, 64], sizes = [8, 32], strides = [1, 1]} : vector<8x128xf32> to vector<8x32xf32>
    %91 = arith.mulf %80, %90 : vector<8x32xf32>
    %92 = arith.addf %89, %91 : vector<8x32xf32>
    %93 = math.tanh %92 : vector<8x32xf32>
    %cst_20 = arith.constant 1.000000e+00 : f32
    %94 = vector.broadcast %cst_20 : f32 to vector<8x32xf32>
    %95 = arith.subf %94, %88 : vector<8x32xf32>
    %96 = arith.mulf %95, %93 : vector<8x32xf32>
    %97 = arith.mulf %88, %68 : vector<8x32xf32>
    %98 = arith.addf %96, %97 : vector<8x32xf32>
    %99 = vector.extract_strided_slice %5 {offsets = [24, 0], sizes = [8, 128], strides = [1, 1]} : vector<64x128xf32> to vector<8x128xf32>
    %cst_21 = arith.constant dense<0.000000e+00> : vector<8x128xf32>
    %100 = tpu.matmul %98, %6, %cst_21 {dimension_numbers = #tpu.dot_dimension_numbers<[1], [0], [0], [1], [0, 0, 1, 1], [], []>} : vector<8x32xf32>, vector<32x128xf32>, vector<8x128xf32> -> vector<8x128xf32>
    %101 = vector.broadcast %7 : vector<1x128xf32> to vector<8x128xf32>
    %102 = arith.addf %100, %101 : vector<8x128xf32>
    %103 = vector.extract_strided_slice %99 {offsets = [0, 0], sizes = [8, 32], strides = [1, 1]} : vector<8x128xf32> to vector<8x32xf32>
    %104 = vector.extract_strided_slice %102 {offsets = [0, 0], sizes = [8, 32], strides = [1, 1]} : vector<8x128xf32> to vector<8x32xf32>
    %105 = arith.addf %103, %104 : vector<8x32xf32>
    %106 = arith.negf %105 : vector<8x32xf32>
    %107 = math.exp %106 : vector<8x32xf32>
    %cst_22 = arith.constant 1.000000e+00 : f32
    %108 = vector.broadcast %cst_22 : f32 to vector<8x32xf32>
    %109 = arith.addf %108, %107 : vector<8x32xf32>
    %110 = arith.divf %108, %109 : vector<8x32xf32>
    %111 = vector.extract_strided_slice %99 {offsets = [0, 32], sizes = [8, 32], strides = [1, 1]} : vector<8x128xf32> to vector<8x32xf32>
    %112 = vector.extract_strided_slice %102 {offsets = [0, 32], sizes = [8, 32], strides = [1, 1]} : vector<8x128xf32> to vector<8x32xf32>
    %113 = arith.addf %111, %112 : vector<8x32xf32>
    %114 = arith.negf %113 : vector<8x32xf32>
    %115 = math.exp %114 : vector<8x32xf32>
    %cst_23 = arith.constant 1.000000e+00 : f32
    %116 = vector.broadcast %cst_23 : f32 to vector<8x32xf32>
    %117 = arith.addf %116, %115 : vector<8x32xf32>
    %118 = arith.divf %116, %117 : vector<8x32xf32>
    %119 = vector.extract_strided_slice %99 {offsets = [0, 64], sizes = [8, 32], strides = [1, 1]} : vector<8x128xf32> to vector<8x32xf32>
    %120 = vector.extract_strided_slice %102 {offsets = [0, 64], sizes = [8, 32], strides = [1, 1]} : vector<8x128xf32> to vector<8x32xf32>
    %121 = arith.mulf %110, %120 : vector<8x32xf32>
    %122 = arith.addf %119, %121 : vector<8x32xf32>
    %123 = math.tanh %122 : vector<8x32xf32>
    %cst_24 = arith.constant 1.000000e+00 : f32
    %124 = vector.broadcast %cst_24 : f32 to vector<8x32xf32>
    %125 = arith.subf %124, %118 : vector<8x32xf32>
    %126 = arith.mulf %125, %123 : vector<8x32xf32>
    %127 = arith.mulf %118, %98 : vector<8x32xf32>
    %128 = arith.addf %126, %127 : vector<8x32xf32>
    %129 = vector.extract_strided_slice %5 {offsets = [32, 0], sizes = [8, 128], strides = [1, 1]} : vector<64x128xf32> to vector<8x128xf32>
    %cst_25 = arith.constant dense<0.000000e+00> : vector<8x128xf32>
    %130 = tpu.matmul %128, %6, %cst_25 {dimension_numbers = #tpu.dot_dimension_numbers<[1], [0], [0], [1], [0, 0, 1, 1], [], []>} : vector<8x32xf32>, vector<32x128xf32>, vector<8x128xf32> -> vector<8x128xf32>
    %131 = vector.broadcast %7 : vector<1x128xf32> to vector<8x128xf32>
    %132 = arith.addf %130, %131 : vector<8x128xf32>
    %133 = vector.extract_strided_slice %129 {offsets = [0, 0], sizes = [8, 32], strides = [1, 1]} : vector<8x128xf32> to vector<8x32xf32>
    %134 = vector.extract_strided_slice %132 {offsets = [0, 0], sizes = [8, 32], strides = [1, 1]} : vector<8x128xf32> to vector<8x32xf32>
    %135 = arith.addf %133, %134 : vector<8x32xf32>
    %136 = arith.negf %135 : vector<8x32xf32>
    %137 = math.exp %136 : vector<8x32xf32>
    %cst_26 = arith.constant 1.000000e+00 : f32
    %138 = vector.broadcast %cst_26 : f32 to vector<8x32xf32>
    %139 = arith.addf %138, %137 : vector<8x32xf32>
    %140 = arith.divf %138, %139 : vector<8x32xf32>
    %141 = vector.extract_strided_slice %129 {offsets = [0, 32], sizes = [8, 32], strides = [1, 1]} : vector<8x128xf32> to vector<8x32xf32>
    %142 = vector.extract_strided_slice %132 {offsets = [0, 32], sizes = [8, 32], strides = [1, 1]} : vector<8x128xf32> to vector<8x32xf32>
    %143 = arith.addf %141, %142 : vector<8x32xf32>
    %144 = arith.negf %143 : vector<8x32xf32>
    %145 = math.exp %144 : vector<8x32xf32>
    %cst_27 = arith.constant 1.000000e+00 : f32
    %146 = vector.broadcast %cst_27 : f32 to vector<8x32xf32>
    %147 = arith.addf %146, %145 : vector<8x32xf32>
    %148 = arith.divf %146, %147 : vector<8x32xf32>
    %149 = vector.extract_strided_slice %129 {offsets = [0, 64], sizes = [8, 32], strides = [1, 1]} : vector<8x128xf32> to vector<8x32xf32>
    %150 = vector.extract_strided_slice %132 {offsets = [0, 64], sizes = [8, 32], strides = [1, 1]} : vector<8x128xf32> to vector<8x32xf32>
    %151 = arith.mulf %140, %150 : vector<8x32xf32>
    %152 = arith.addf %149, %151 : vector<8x32xf32>
    %153 = math.tanh %152 : vector<8x32xf32>
    %cst_28 = arith.constant 1.000000e+00 : f32
    %154 = vector.broadcast %cst_28 : f32 to vector<8x32xf32>
    %155 = arith.subf %154, %148 : vector<8x32xf32>
    %156 = arith.mulf %155, %153 : vector<8x32xf32>
    %157 = arith.mulf %148, %128 : vector<8x32xf32>
    %158 = arith.addf %156, %157 : vector<8x32xf32>
    %159 = vector.extract_strided_slice %5 {offsets = [40, 0], sizes = [8, 128], strides = [1, 1]} : vector<64x128xf32> to vector<8x128xf32>
    %cst_29 = arith.constant dense<0.000000e+00> : vector<8x128xf32>
    %160 = tpu.matmul %158, %6, %cst_29 {dimension_numbers = #tpu.dot_dimension_numbers<[1], [0], [0], [1], [0, 0, 1, 1], [], []>} : vector<8x32xf32>, vector<32x128xf32>, vector<8x128xf32> -> vector<8x128xf32>
    %161 = vector.broadcast %7 : vector<1x128xf32> to vector<8x128xf32>
    %162 = arith.addf %160, %161 : vector<8x128xf32>
    %163 = vector.extract_strided_slice %159 {offsets = [0, 0], sizes = [8, 32], strides = [1, 1]} : vector<8x128xf32> to vector<8x32xf32>
    %164 = vector.extract_strided_slice %162 {offsets = [0, 0], sizes = [8, 32], strides = [1, 1]} : vector<8x128xf32> to vector<8x32xf32>
    %165 = arith.addf %163, %164 : vector<8x32xf32>
    %166 = arith.negf %165 : vector<8x32xf32>
    %167 = math.exp %166 : vector<8x32xf32>
    %cst_30 = arith.constant 1.000000e+00 : f32
    %168 = vector.broadcast %cst_30 : f32 to vector<8x32xf32>
    %169 = arith.addf %168, %167 : vector<8x32xf32>
    %170 = arith.divf %168, %169 : vector<8x32xf32>
    %171 = vector.extract_strided_slice %159 {offsets = [0, 32], sizes = [8, 32], strides = [1, 1]} : vector<8x128xf32> to vector<8x32xf32>
    %172 = vector.extract_strided_slice %162 {offsets = [0, 32], sizes = [8, 32], strides = [1, 1]} : vector<8x128xf32> to vector<8x32xf32>
    %173 = arith.addf %171, %172 : vector<8x32xf32>
    %174 = arith.negf %173 : vector<8x32xf32>
    %175 = math.exp %174 : vector<8x32xf32>
    %cst_31 = arith.constant 1.000000e+00 : f32
    %176 = vector.broadcast %cst_31 : f32 to vector<8x32xf32>
    %177 = arith.addf %176, %175 : vector<8x32xf32>
    %178 = arith.divf %176, %177 : vector<8x32xf32>
    %179 = vector.extract_strided_slice %159 {offsets = [0, 64], sizes = [8, 32], strides = [1, 1]} : vector<8x128xf32> to vector<8x32xf32>
    %180 = vector.extract_strided_slice %162 {offsets = [0, 64], sizes = [8, 32], strides = [1, 1]} : vector<8x128xf32> to vector<8x32xf32>
    %181 = arith.mulf %170, %180 : vector<8x32xf32>
    %182 = arith.addf %179, %181 : vector<8x32xf32>
    %183 = math.tanh %182 : vector<8x32xf32>
    %cst_32 = arith.constant 1.000000e+00 : f32
    %184 = vector.broadcast %cst_32 : f32 to vector<8x32xf32>
    %185 = arith.subf %184, %178 : vector<8x32xf32>
    %186 = arith.mulf %185, %183 : vector<8x32xf32>
    %187 = arith.mulf %178, %158 : vector<8x32xf32>
    %188 = arith.addf %186, %187 : vector<8x32xf32>
    %189 = vector.extract_strided_slice %5 {offsets = [48, 0], sizes = [8, 128], strides = [1, 1]} : vector<64x128xf32> to vector<8x128xf32>
    %cst_33 = arith.constant dense<0.000000e+00> : vector<8x128xf32>
    %190 = tpu.matmul %188, %6, %cst_33 {dimension_numbers = #tpu.dot_dimension_numbers<[1], [0], [0], [1], [0, 0, 1, 1], [], []>} : vector<8x32xf32>, vector<32x128xf32>, vector<8x128xf32> -> vector<8x128xf32>
    %191 = vector.broadcast %7 : vector<1x128xf32> to vector<8x128xf32>
    %192 = arith.addf %190, %191 : vector<8x128xf32>
    %193 = vector.extract_strided_slice %189 {offsets = [0, 0], sizes = [8, 32], strides = [1, 1]} : vector<8x128xf32> to vector<8x32xf32>
    %194 = vector.extract_strided_slice %192 {offsets = [0, 0], sizes = [8, 32], strides = [1, 1]} : vector<8x128xf32> to vector<8x32xf32>
    %195 = arith.addf %193, %194 : vector<8x32xf32>
    %196 = arith.negf %195 : vector<8x32xf32>
    %197 = math.exp %196 : vector<8x32xf32>
    %cst_34 = arith.constant 1.000000e+00 : f32
    %198 = vector.broadcast %cst_34 : f32 to vector<8x32xf32>
    %199 = arith.addf %198, %197 : vector<8x32xf32>
    %200 = arith.divf %198, %199 : vector<8x32xf32>
    %201 = vector.extract_strided_slice %189 {offsets = [0, 32], sizes = [8, 32], strides = [1, 1]} : vector<8x128xf32> to vector<8x32xf32>
    %202 = vector.extract_strided_slice %192 {offsets = [0, 32], sizes = [8, 32], strides = [1, 1]} : vector<8x128xf32> to vector<8x32xf32>
    %203 = arith.addf %201, %202 : vector<8x32xf32>
    %204 = arith.negf %203 : vector<8x32xf32>
    %205 = math.exp %204 : vector<8x32xf32>
    %cst_35 = arith.constant 1.000000e+00 : f32
    %206 = vector.broadcast %cst_35 : f32 to vector<8x32xf32>
    %207 = arith.addf %206, %205 : vector<8x32xf32>
    %208 = arith.divf %206, %207 : vector<8x32xf32>
    %209 = vector.extract_strided_slice %189 {offsets = [0, 64], sizes = [8, 32], strides = [1, 1]} : vector<8x128xf32> to vector<8x32xf32>
    %210 = vector.extract_strided_slice %192 {offsets = [0, 64], sizes = [8, 32], strides = [1, 1]} : vector<8x128xf32> to vector<8x32xf32>
    %211 = arith.mulf %200, %210 : vector<8x32xf32>
    %212 = arith.addf %209, %211 : vector<8x32xf32>
    %213 = math.tanh %212 : vector<8x32xf32>
    %cst_36 = arith.constant 1.000000e+00 : f32
    %214 = vector.broadcast %cst_36 : f32 to vector<8x32xf32>
    %215 = arith.subf %214, %208 : vector<8x32xf32>
    %216 = arith.mulf %215, %213 : vector<8x32xf32>
    %217 = arith.mulf %208, %188 : vector<8x32xf32>
    %218 = arith.addf %216, %217 : vector<8x32xf32>
    %219 = vector.extract_strided_slice %5 {offsets = [56, 0], sizes = [8, 128], strides = [1, 1]} : vector<64x128xf32> to vector<8x128xf32>
    %cst_37 = arith.constant dense<0.000000e+00> : vector<8x128xf32>
    %220 = tpu.matmul %218, %6, %cst_37 {dimension_numbers = #tpu.dot_dimension_numbers<[1], [0], [0], [1], [0, 0, 1, 1], [], []>} : vector<8x32xf32>, vector<32x128xf32>, vector<8x128xf32> -> vector<8x128xf32>
    %221 = vector.broadcast %7 : vector<1x128xf32> to vector<8x128xf32>
    %222 = arith.addf %220, %221 : vector<8x128xf32>
    %223 = vector.extract_strided_slice %219 {offsets = [0, 0], sizes = [8, 32], strides = [1, 1]} : vector<8x128xf32> to vector<8x32xf32>
    %224 = vector.extract_strided_slice %222 {offsets = [0, 0], sizes = [8, 32], strides = [1, 1]} : vector<8x128xf32> to vector<8x32xf32>
    %225 = arith.addf %223, %224 : vector<8x32xf32>
    %226 = arith.negf %225 : vector<8x32xf32>
    %227 = math.exp %226 : vector<8x32xf32>
    %cst_38 = arith.constant 1.000000e+00 : f32
    %228 = vector.broadcast %cst_38 : f32 to vector<8x32xf32>
    %229 = arith.addf %228, %227 : vector<8x32xf32>
    %230 = arith.divf %228, %229 : vector<8x32xf32>
    %231 = vector.extract_strided_slice %219 {offsets = [0, 32], sizes = [8, 32], strides = [1, 1]} : vector<8x128xf32> to vector<8x32xf32>
    %232 = vector.extract_strided_slice %222 {offsets = [0, 32], sizes = [8, 32], strides = [1, 1]} : vector<8x128xf32> to vector<8x32xf32>
    %233 = arith.addf %231, %232 : vector<8x32xf32>
    %234 = arith.negf %233 : vector<8x32xf32>
    %235 = math.exp %234 : vector<8x32xf32>
    %cst_39 = arith.constant 1.000000e+00 : f32
    %236 = vector.broadcast %cst_39 : f32 to vector<8x32xf32>
    %237 = arith.addf %236, %235 : vector<8x32xf32>
    %238 = arith.divf %236, %237 : vector<8x32xf32>
    %239 = vector.extract_strided_slice %219 {offsets = [0, 64], sizes = [8, 32], strides = [1, 1]} : vector<8x128xf32> to vector<8x32xf32>
    %240 = vector.extract_strided_slice %222 {offsets = [0, 64], sizes = [8, 32], strides = [1, 1]} : vector<8x128xf32> to vector<8x32xf32>
    %241 = arith.mulf %230, %240 : vector<8x32xf32>
    %242 = arith.addf %239, %241 : vector<8x32xf32>
    %243 = math.tanh %242 : vector<8x32xf32>
    %cst_40 = arith.constant 1.000000e+00 : f32
    %244 = vector.broadcast %cst_40 : f32 to vector<8x32xf32>
    %245 = arith.subf %244, %238 : vector<8x32xf32>
    %246 = arith.mulf %245, %243 : vector<8x32xf32>
    %247 = arith.mulf %238, %218 : vector<8x32xf32>
    %248 = arith.addf %246, %247 : vector<8x32xf32>
    %c0_41 = arith.constant 0 : index
    %c0_42 = arith.constant 0 : index
    %249 = vector.load %arg4[%c0_41, %c0_42] : memref<32x128xf32, #tpu.memory_space<vmem>>, vector<32x128xf32>
    %cst_43 = arith.constant dense<0.000000e+00> : vector<8x128xf32>
    %250 = tpu.matmul %248, %249, %cst_43 {dimension_numbers = #tpu.dot_dimension_numbers<[1], [0], [0], [1], [0, 0, 1, 1], [], []>} : vector<8x32xf32>, vector<32x128xf32>, vector<8x128xf32> -> vector<8x128xf32>
    %c2 = arith.constant 2 : index
    %c0_44 = arith.constant 0 : index
    %251 = vector.load %arg3[%c2, %c0_44] : memref<8x128xf32, #tpu.memory_space<vmem>>, vector<1x128xf32>
    %252 = vector.broadcast %251 : vector<1x128xf32> to vector<8x128xf32>
    %253 = arith.addf %250, %252 : vector<8x128xf32>
    %c0_45 = arith.constant 0 : index
    %c0_46 = arith.constant 0 : index
    %254 = vector.load %arg5[%c0_45, %c0_46] : memref<8x128xf32, #tpu.memory_space<vmem>>, vector<8x128xf32>
    tpu.vector_store %arg5[%c0_45, %c0_46], %253 {strides = array<i32>} : memref<8x128xf32, #tpu.memory_space<vmem>>, vector<8x128xf32>,
    return
  }
}

</mosaic_0001>

<bundles_post_ra>
// kernel: tpu_custom_call.1
= control target key start
LH: loop header
LB: loop body
LE: loop exit
PB: predicated region body
PF: predicated region fallthrough
CT: control target
= control target key end

     0   :  { %10 = vsyncpa [#allocation3], 0  ;;  %s1664_s0 = inlined_call_operand.vmem [shape: f32[64,4], index: 0, kind: input, shape index: {}]   ;;  %s1665_s1 = inlined_call_operand.hbm [shape: f32[4,128], index: 1, kind: input, shape index: {}]   ;;  %s1666_s2 = inlined_call_operand.vmem [shape: f32[32,128], index: 2, kind: input, shape index: {}]   ;;  %s1667_s3 = inlined_call_operand.vmem [shape: f32[8,128], index: 3, kind: input, shape index: {}]   ;;  %s1668_s4 = inlined_call_operand.vmem [shape: f32[32,128], index: 4, kind: input, shape index: {}]   ;;  %s1669_s5 = inlined_call_operand.hbm [shape: f32[8,128], index: 5, kind: output, shape index: {}]  }
   0x1   :  { %11 = vsyncpa [#allocation4], 0  ;;  %s1390_s18 = smov [#allocation2]  }
   0x2   :  { %s20_s19 = sshll.u32 %s1390_s18, 4  ;;  %s21_s19 = int_to_ptr.vmem [resolvable:$true] %s20_s19 }
   0x3   :  { %s1354_s20 = scalar_lea.vmem %s21_s19, 64  ;;  %p1359_p1 = scmp.lt.s32.totalorder %s21_s19, %s21_s19 }
   0x4   :  { %p1355_p0 = scmp.ne.s32.totalorder %s21_s19, %s1354_s20  ;;  %p1360_p2 = scmp.lt.s32.totalorder %s1354_s20, %s1354_s20 }
   0x6   :  { %p1361_p3 = por %p1360_p2, %p1359_p1 }
   0x8   :  { %p1362_p4 = pnand %p1361_p3, %p1355_p0 }
   0xa   :  { %1365 = shalt.err (!%p1362_p4)
}
   0xb   :  { %23 = dma.hbm_to_vmem [thread:$0]  %s1665_s1, 64, %s21_s19, [#allocation3]  }
   0xc   :  { %1386 = dma.done.wait [#allocation3], 64  }
   0xd   :  { %1387 = vsyncadd [#allocation3], 4294967232  ;;  %v1391_v0 = vmov 0.0   ;;  %vm1392_vm0 = vmmov 0   ;;  %vm72_vm1 = vcmask 1043456   ;;  %v1435_v1 = vld [vmem:[%s1666_s2 + $0x18] sm:$0xff] }
   0xe   :  { %1193 = vmatprep.subr.mxu1 %v1391_v0  ;;  %1201 = vmatprep.mubr.msk.f32.mxu1 %vm1392_vm0, %v1391_v0  ;;  %v1440_v2 = vld [vmem:[%s1666_s2 + $0x10] sm:$0xff]  ;;  %v41_v3 = vld [vmem:[#allocation2] sm:$0xf]  ;;  %vm47_vm2 = vcmask 31744   ;;  %v34_v5 = vld [vmem:[%s1664_s0 + $0x8] sm:$0xff]  ;;  %s1393_s10 = smov 64  }
   0xf   :  { %1194 = vmatpush3.msra.mxu1 %v1435_v1  ;;  %1179 = vmatprep.subr.msk.mxu0 %vm72_vm1, %v41_v3  ;;  %v33_v4 = vld [vmem:[%s1664_s0] sm:$0xff]  ;;  %v1453_v6 = vld [vmem:[%s1666_s2 + $0x8] sm:$0xff]  ;;  %s1394_s13 = smov 96   ;;  %vm190_vm3 = vcmask 261120   ;;  %v35_v45 = vld [vmem:[%s1664_s0 + $0x10] sm:$0xff] }
  0x10   :  { %1195 = vmatprep.subr.mxu1 %v1391_v0  ;;  %1180 = vmatpush3.msk.msra.mxu0 %vm72_vm1, %v41_v3  ;;  %v1462_v7 = vld [vmem:[%s1666_s2] sm:$0xff]  ;;  %v36_v46 = vld [vmem:[%s1664_s0 + $0x18] sm:$0xff]  ;;  %v38_v48 = vld [vmem:[%s1664_s0 + $0x28] sm:$0xff] }
  0x11   :  { %1196 = vmatpush3.msra.mxu1 %v1440_v2  ;;  %1181 = vmatprep.mubr.msk.f32.mxu0 %vm47_vm2, %v33_v4  ;;  %v1491_v8 = vld [vmem:[%s1667_s3 + $0x1] ss:$0 sm:$0xff]  ;;  %v1498_v13 = vld [vmem:[%s1667_s3] ss:$0 sm:$0xff]  ;;  %v39_v49 = vld [vmem:[%s1664_s0 + $0x30] sm:$0xff] }
  0x12   :  { %1197 = vmatprep.subr.mxu1 %v1391_v0  ;;  %1182 = vmatmul.mubr.msk.f32.vlgmr.msra.gmra.mxu0 %vm47_vm2, %v34_v5  ;;  %v37_v47 = vld [vmem:[%s1664_s0 + $0x20] sm:$0xff]  ;;  %v40_v50 = vld [vmem:[%s1664_s0 + $0x38] sm:$0xff] }
  0x13   :  { %1198 = vmatpush3.msra.mxu1 %v1453_v6  ;;  %1215 = vmatprep.subr.mxu0 %v1391_v0 }
  0x14   :  { %1199 = vmatprep.subr.mxu1 %v1391_v0  ;;  %1216 = vmatpush3.msra.mxu0 %v1435_v1 }
  0x15   :  { %1200 = vmatpush3.msra.mxu1 %v1462_v7  ;;  %1217 = vmatprep.subr.mxu0 %v1391_v0 }
  0x16   :  { %1202 = vmatmul.mubr.f32.vlgmr.msra.gmra.mxu1 %v1391_v0  ;;  %1204 = vmatprep.subr.mxu1 %v1391_v0 }
  0x17   :  { %1205 = vmatpush3.msra.mxu1 %v1435_v1  ;;  %1212 = vmatprep.mubr.msk.f32.mxu1 %vm1392_vm0, %v1391_v0 }
  0x18   :  { %1206 = vmatprep.subr.mxu1 %v1391_v0  ;;  %1218 = vmatpush3.msra.mxu0 %v1440_v2 }
  0x19   :  { %1207 = vmatpush3.msra.mxu1 %v1440_v2  ;;  %1219 = vmatprep.subr.mxu0 %v1391_v0 }
  0x1a   :  { %1208 = vmatprep.subr.mxu1 %v1391_v0  ;;  %1220 = vmatpush3.msra.mxu0 %v1453_v6 }
  0x1b   :  { %1209 = vmatpush3.msra.mxu1 %v1453_v6  ;;  %1221 = vmatprep.subr.mxu0 %v1391_v0 }
  0x1c   :  { %1210 = vmatprep.subr.mxu1 %v1391_v0  ;;  %1222 = vmatpush3.msra.mxu0 %v1462_v7 }
  0x1d   :  { %1211 = vmatpush3.msra.mxu1 %v1462_v7  ;;  %1237 = vmatprep.subr.mxu0 %v1391_v0 }
  0x1e   :  { %1226 = vmatprep.subr.mxu1 %v1391_v0  ;;  %1184 = vmatprep.mubr.msk.f32.mxu0 %vm47_vm2, %v35_v45 }
  0x1f   :  { %1185 = vmatmul.mubr.msk.f32.gmra.mxu0 %vm47_vm2, %v36_v46 }
  0x20   :  { %1187 = vmatprep.mubr.msk.f32.mxu0 %vm47_vm2, %v37_v47 }
  0x23   :  { %1188 = vmatmul.mubr.msk.f32.gmra.mxu0 %vm47_vm2, %v38_v48 }
  0x24   :  { %1190 = vmatprep.mubr.msk.f32.mxu0 %vm47_vm2, %v39_v49 }
  0x27   :  { %1191 = vmatmul.mubr.msk.f32.gmra.mxu0 %vm47_vm2, %v40_v50 }
  0x28   :  { %1223 = vmatprep.mubr.msk.f32.mxu0 %vm1392_vm0, %v1391_v0 }
  0xd2   :  { %v1183_v12 = vpop.f32.mrf.mxu0 }
  0xd3   :  { %v148_v35 = vadd.f32 %v1183_v12, %v1498_v13 }
  0xd4   :  { %v142_v14 = vpop.f32.mrf.mxu0 }
  0xd5   :  { %v143_v15 = vadd.f32 %v1498_v13, %v142_v14 }
  0xd6   :  { %v260_v9 = vpop.f32.mrf.mxu1 }
  0xd7   :  { %v261_v10 = vadd.f32 %v1491_v8, %v260_v9 }
  0xd8   :  { %v1203_v11 = vpop.f32.mrf.mxu1 }
  0xd9   :  { %272 = vrot.lane.b32.xlu0 %v261_v10, %s1393_s10  ;;  %v264_v16 = vadd.f32 %v261_v10, %v143_v15 }
  0xdb   :  { %v1108_v17 = vmul.f32 -1.442695, %v264_v16 }
  0xdd   :  { %1298 = vpow2.f32 %v1108_v17 }
  0xdf   :  { %v1186_v58 = vpop.f32.mrf.mxu0 }
  0xe1   :  { %v152_v59 = vpop.f32.mrf.mxu0 }
  0xe2   :  { %v153_v9 = vadd.f32 %v1498_v13, %v152_v59 }
  0xe3   :  { %v1558_v60 = vpop.f32.mrf.mxu0 }
  0xe5   :  { %v1560_v61 = vpop.f32.mrf.mxu0 }
  0xe6   :  { %v163_v50 = vadd.f32 %v1498_v13, %v1560_v61 }
  0xe7   :  { %v1562_v62 = vpop.f32.mrf.mxu0 }
  0xe9   :  { %v1564_v63 = vpop.f32.mrf.mxu0 }
  0xea   :  { %v1299_v18 = vpop.eup %1298 }
  0xeb   :  { %v268_v19 = vadd.f32 1.0, %v1299_v18 }
  0xed   :  { %1300 = vrcp.f32 %v268_v19 }
  0xfa   :  { %v1301_v20 = vpop.eup %1300 }
  0xfb   :  { %v282_v26 = vsub.f32 1.0, %v1301_v20  ;;  %v288_v28 = vmul.f32 0.0, %v1301_v20 }
 0x14b   :  { %v273_v21 = vpop.permute.xlu0 %272 }
 0x14c   :  { %v275_v22 = vmul.f32 %v1301_v20, %v273_v21 }
 0x14e   :  { %277 = vrot.lane.b32.xlu0 %v275_v22, %s1393_s10 }
 0x1c0   :  { %v278_v23 = vpop.permute.xlu0 %277 }
 0x1c1   :  { %v280_v24 = vadd.f32 %v278_v23, %v143_v15 }
 0x1c3   :  { %1302 = vtanh.f32 %v280_v24 }
 0x1d0   :  { %v1303_v25 = vpop.eup %1302 }
 0x1d1   :  { %284 = vrot.lane.b32.xlu1 %v1303_v25, %s1394_s13 }
 0x243   :  { %v285_v27 = vpop.permute.xlu1 %284 }
 0x244   :  { %v287_v29 = vmul.f32 %v285_v27, %v282_v26 }
 0x246   :  { %v289_v30 = vadd.f32 %v288_v28, %v287_v29 }
 0x248   :  { %291 = vrot.lane.b32.xlu1 %v289_v30, %s1394_s13 }
 0x2ba   :  { %v292_v31 = vpop.permute.xlu1 %291 }
 0x2bb   :  { %1213 = vmatmul.mubr.msk.f32.vlgmr.msra.gmra.mxu1 %vm190_vm3, %v292_v31 }
 0x2bc   :  { %1227 = vmatpush3.msra.mxu1 %v1435_v1  ;;  %1234 = vmatprep.mubr.msk.f32.mxu1 %vm1392_vm0, %v1391_v0 }
 0x2bd   :  { %1228 = vmatprep.subr.mxu1 %v1391_v0 }
 0x2be   :  { %1229 = vmatpush3.msra.mxu1 %v1440_v2 }
 0x2bf   :  { %1230 = vmatprep.subr.mxu1 %v1391_v0 }
 0x2c0   :  { %1231 = vmatpush3.msra.mxu1 %v1453_v6 }
 0x2c1   :  { %1232 = vmatprep.subr.mxu1 %v1391_v0 }
 0x2c2   :  { %1233 = vmatpush3.msra.mxu1 %v1462_v7 }
 0x2c3   :  { %1248 = vmatprep.subr.mxu1 %v1391_v0 }
 0x37b   :  { %v361_v32 = vpop.f32.mrf.mxu1 }
 0x37c   :  { %v362_v33 = vadd.f32 %v1491_v8, %v361_v32 }
 0x37d   :  { %v1214_v34 = vpop.f32.mrf.mxu1 }
 0x37e   :  { %373 = vrot.lane.b32.xlu0 %v362_v33, %s1393_s10  ;;  %v365_v36 = vadd.f32 %v362_v33, %v148_v35 }
 0x380   :  { %v1110_v37 = vmul.f32 -1.442695, %v365_v36 }
 0x382   :  { %1304 = vpow2.f32 %v1110_v37 }
 0x38f   :  { %v1305_v38 = vpop.eup %1304 }
 0x390   :  { %v369_v39 = vadd.f32 1.0, %v1305_v38 }
 0x392   :  { %1306 = vrcp.f32 %v369_v39 }
 0x39f   :  { %v1307_v40 = vpop.eup %1306 }
 0x3a0   :  { %v383_v52 = vsub.f32 1.0, %v1307_v40  ;;  %v389_v54 = vmul.f32 %v1307_v40, %v289_v30  ;;  %v158_v30 = vadd.f32 %v1186_v58, %v1498_v13 }
 0x3f0   :  { %v374_v41 = vpop.permute.xlu0 %373 }
 0x3f1   :  { %v376_v42 = vmul.f32 %v1307_v40, %v374_v41 }
 0x3f3   :  { %378 = vrot.lane.b32.xlu1 %v376_v42, %s1393_s10 }
 0x465   :  { %v379_v43 = vpop.permute.xlu1 %378 }
 0x466   :  { %v381_v44 = vadd.f32 %v379_v43, %v148_v35 }
 0x468   :  { %1308 = vtanh.f32 %v381_v44 }
 0x475   :  { %v1309_v51 = vpop.eup %1308 }
 0x476   :  { %385 = vrot.lane.b32.xlu0 %v1309_v51, %s1394_s13 }
 0x4e8   :  { %v386_v53 = vpop.permute.xlu0 %385 }
 0x4e9   :  { %v388_v55 = vmul.f32 %v386_v53, %v383_v52 }
 0x4eb   :  { %v390_v56 = vadd.f32 %v389_v54, %v388_v55 }
 0x4ed   :  { %392 = vrot.lane.b32.xlu1 %v390_v56, %s1394_s13 }
 0x55f   :  { %v393_v57 = vpop.permute.xlu1 %392 }
 0x560   :  { %1224 = vmatmul.mubr.msk.f32.vlgmr.msra.gmra.mxu0 %vm190_vm3, %v393_v57 }
 0x561   :  { %1238 = vmatpush3.msra.mxu0 %v1435_v1  ;;  %1245 = vmatprep.mubr.msk.f32.mxu0 %vm1392_vm0, %v1391_v0 }
 0x562   :  { %1239 = vmatprep.subr.mxu0 %v1391_v0 }
 0x563   :  { %1240 = vmatpush3.msra.mxu0 %v1440_v2 }
 0x564   :  { %1241 = vmatprep.subr.mxu0 %v1391_v0 }
 0x565   :  { %1242 = vmatpush3.msra.mxu0 %v1453_v6 }
 0x566   :  { %1243 = vmatprep.subr.mxu0 %v1391_v0 }
 0x567   :  { %1244 = vmatpush3.msra.mxu0 %v1462_v7 }
 0x568   :  { %1259 = vmatprep.subr.mxu0 %v1391_v0 }
 0x620   :  { %v462_v3 = vpop.f32.mrf.mxu0 }
 0x621   :  { %v463_v4 = vadd.f32 %v1491_v8, %v462_v3 }
 0x622   :  { %v1225_v5 = vpop.f32.mrf.mxu0 }
 0x623   :  { %474 = vrot.lane.b32.xlu0 %v463_v4, %s1393_s10  ;;  %v466_v10 = vadd.f32 %v463_v4, %v153_v9 }
 0x625   :  { %v1112_v11 = vmul.f32 -1.442695, %v466_v10 }
 0x627   :  { %1310 = vpow2.f32 %v1112_v11 }
 0x634   :  { %v1311_v12 = vpop.eup %1310 }
 0x635   :  { %v470_v14 = vadd.f32 1.0, %v1311_v12 }
 0x637   :  { %1312 = vrcp.f32 %v470_v14 }
 0x644   :  { %v1313_v15 = vpop.eup %1312 }
 0x645   :  { %v484_v21 = vsub.f32 1.0, %v1313_v15  ;;  %v490_v23 = vmul.f32 %v1313_v15, %v390_v56 }
 0x695   :  { %v475_v16 = vpop.permute.xlu0 %474 }
 0x696   :  { %v477_v17 = vmul.f32 %v1313_v15, %v475_v16 }
 0x698   :  { %479 = vrot.lane.b32.xlu1 %v477_v17, %s1393_s10 }
 0x70a   :  { %v480_v18 = vpop.permute.xlu1 %479 }
 0x70b   :  { %v482_v19 = vadd.f32 %v480_v18, %v153_v9 }
 0x70d   :  { %1314 = vtanh.f32 %v482_v19 }
 0x71a   :  { %v1315_v20 = vpop.eup %1314 }
 0x71b   :  { %486 = vrot.lane.b32.xlu0 %v1315_v20, %s1394_s13 }
 0x78d   :  { %v487_v22 = vpop.permute.xlu0 %486 }
 0x78e   :  { %v489_v24 = vmul.f32 %v487_v22, %v484_v21 }
 0x790   :  { %v491_v25 = vadd.f32 %v490_v23, %v489_v24 }
 0x792   :  { %493 = vrot.lane.b32.xlu1 %v491_v25, %s1394_s13 }
 0x804   :  { %v494_v26 = vpop.permute.xlu1 %493 }
 0x805   :  { %1235 = vmatmul.mubr.msk.f32.vlgmr.msra.gmra.mxu1 %vm190_vm3, %v494_v26 }
 0x806   :  { %1249 = vmatpush3.msra.mxu1 %v1435_v1  ;;  %1256 = vmatprep.mubr.msk.f32.mxu1 %vm1392_vm0, %v1391_v0 }
 0x807   :  { %1250 = vmatprep.subr.mxu1 %v1391_v0 }
 0x808   :  { %1251 = vmatpush3.msra.mxu1 %v1440_v2 }
 0x809   :  { %1252 = vmatprep.subr.mxu1 %v1391_v0 }
 0x80a   :  { %1253 = vmatpush3.msra.mxu1 %v1453_v6 }
 0x80b   :  { %1254 = vmatprep.subr.mxu1 %v1391_v0 }
 0x80c   :  { %1255 = vmatpush3.msra.mxu1 %v1462_v7 }
 0x80d   :  { %1270 = vmatprep.subr.mxu1 %v1391_v0 }
 0x8c5   :  { %v563_v27 = vpop.f32.mrf.mxu1 }
 0x8c6   :  { %v564_v28 = vadd.f32 %v1491_v8, %v563_v27 }
 0x8c7   :  { %v1236_v29 = vpop.f32.mrf.mxu1 }
 0x8c8   :  { %575 = vrot.lane.b32.xlu0 %v564_v28, %s1393_s10  ;;  %v567_v31 = vadd.f32 %v564_v28, %v158_v30 }
 0x8ca   :  { %v1114_v32 = vmul.f32 -1.442695, %v567_v31  ;;  %v173_v31 = vadd.f32 %v1498_v13, %v1564_v63 }
 0x8cc   :  { %1316 = vpow2.f32 %v1114_v32 }
 0x8d9   :  { %v1317_v33 = vpop.eup %1316 }
 0x8da   :  { %v571_v34 = vadd.f32 1.0, %v1317_v33 }
 0x8dc   :  { %1318 = vrcp.f32 %v571_v34 }
 0x8e9   :  { %v1319_v35 = vpop.eup %1318 }
 0x8ea   :  { %v585_v41 = vsub.f32 1.0, %v1319_v35  ;;  %v591_v43 = vmul.f32 %v1319_v35, %v491_v25 }
 0x93a   :  { %v576_v36 = vpop.permute.xlu0 %575 }
 0x93b   :  { %v578_v37 = vmul.f32 %v1319_v35, %v576_v36 }
 0x93d   :  { %580 = vrot.lane.b32.xlu1 %v578_v37, %s1393_s10 }
 0x9af   :  { %v581_v38 = vpop.permute.xlu1 %580 }
 0x9b0   :  { %v583_v39 = vadd.f32 %v581_v38, %v158_v30 }
 0x9b2   :  { %1320 = vtanh.f32 %v583_v39 }
 0x9bf   :  { %v1321_v40 = vpop.eup %1320 }
 0x9c0   :  { %587 = vrot.lane.b32.xlu0 %v1321_v40, %s1394_s13 }
 0xa32   :  { %v588_v42 = vpop.permute.xlu0 %587 }
 0xa33   :  { %v590_v44 = vmul.f32 %v588_v42, %v585_v41 }
 0xa35   :  { %v592_v45 = vadd.f32 %v591_v43, %v590_v44 }
 0xa37   :  { %594 = vrot.lane.b32.xlu1 %v592_v45, %s1394_s13 }
 0xaa9   :  { %v595_v46 = vpop.permute.xlu1 %594 }
 0xaaa   :  { %1246 = vmatmul.mubr.msk.f32.vlgmr.msra.gmra.mxu0 %vm190_vm3, %v595_v46 }
 0xaab   :  { %1260 = vmatpush3.msra.mxu0 %v1435_v1  ;;  %1267 = vmatprep.mubr.msk.f32.mxu0 %vm1392_vm0, %v1391_v0 }
 0xaac   :  { %1261 = vmatprep.subr.mxu0 %v1391_v0 }
 0xaad   :  { %1262 = vmatpush3.msra.mxu0 %v1440_v2 }
 0xaae   :  { %1263 = vmatprep.subr.mxu0 %v1391_v0 }
 0xaaf   :  { %1264 = vmatpush3.msra.mxu0 %v1453_v6 }
 0xab0   :  { %1265 = vmatprep.subr.mxu0 %v1391_v0 }
 0xab1   :  { %1266 = vmatpush3.msra.mxu0 %v1462_v7 }
 0xab2   :  { %1281 = vmatprep.subr.mxu0 %v1391_v0 }
 0xb6a   :  { %v664_v47 = vpop.f32.mrf.mxu0 }
 0xb6b   :  { %v665_v48 = vadd.f32 %v1491_v8, %v664_v47 }
 0xb6c   :  { %v1247_v49 = vpop.f32.mrf.mxu0 }
 0xb6d   :  { %676 = vrot.lane.b32.xlu0 %v665_v48, %s1393_s10  ;;  %v668_v51 = vadd.f32 %v665_v48, %v163_v50 }
 0xb6f   :  { %v1116_v52 = vmul.f32 -1.442695, %v668_v51 }
 0xb71   :  { %1322 = vpow2.f32 %v1116_v52 }
 0xb7e   :  { %v1323_v53 = vpop.eup %1322 }
 0xb7f   :  { %v672_v54 = vadd.f32 1.0, %v1323_v53 }
 0xb81   :  { %1324 = vrcp.f32 %v672_v54 }
 0xb8e   :  { %v1325_v55 = vpop.eup %1324 }
 0xb8f   :  { %v686_v4 = vsub.f32 1.0, %v1325_v55  ;;  %v692_v61 = vmul.f32 %v1325_v55, %v592_v45 }
 0xbdf   :  { %v677_v56 = vpop.permute.xlu0 %676 }
 0xbe0   :  { %v679_v57 = vmul.f32 %v1325_v55, %v677_v56 }
 0xbe2   :  { %681 = vrot.lane.b32.xlu1 %v679_v57, %s1393_s10 }
 0xc54   :  { %v682_v58 = vpop.permute.xlu1 %681 }
 0xc55   :  { %v684_v59 = vadd.f32 %v682_v58, %v163_v50  ;;  %v178_v50 = vadd.f32 %v1562_v62, %v1498_v13  ;;  %v998_v62 = vld [vmem:[%s1668_s4 + $0x8] sm:$0xff] }
 0xc57   :  { %1326 = vtanh.f32 %v684_v59 }
 0xc64   :  { %v1327_v3 = vpop.eup %1326 }
 0xc65   :  { %688 = vrot.lane.b32.xlu0 %v1327_v3, %s1394_s13  ;;  %v997_v3 = vld [vmem:[%s1668_s4] sm:$0xff] }
 0xcd7   :  { %v689_v5 = vpop.permute.xlu0 %688 }
 0xcd8   :  { %v691_v9 = vmul.f32 %v689_v5, %v686_v4 }
 0xcda   :  { %v693_v10 = vadd.f32 %v692_v61, %v691_v9 }
 0xcdc   :  { %695 = vrot.lane.b32.xlu1 %v693_v10, %s1394_s13 }
 0xd4e   :  { %v696_v11 = vpop.permute.xlu1 %695 }
 0xd4f   :  { %1257 = vmatmul.mubr.msk.f32.vlgmr.msra.gmra.mxu1 %vm190_vm3, %v696_v11 }
 0xd50   :  { %1271 = vmatpush3.msra.mxu1 %v1435_v1  ;;  %1278 = vmatprep.mubr.msk.f32.mxu1 %vm1392_vm0, %v1391_v0  ;;  %v168_v1 = vadd.f32 %v1558_v60, %v1498_v13  ;;  %v999_v13 = vld [vmem:[%s1668_s4 + $0x10] sm:$0xff] }
 0xd51   :  { %1272 = vmatprep.subr.mxu1 %v1391_v0 }
 0xd52   :  { %1273 = vmatpush3.msra.mxu1 %v1440_v2 }
 0xd53   :  { %1274 = vmatprep.subr.mxu1 %v1391_v0 }
 0xd54   :  { %1275 = vmatpush3.msra.mxu1 %v1453_v6 }
 0xd55   :  { %1276 = vmatprep.subr.mxu1 %v1391_v0 }
 0xd56   :  { %1277 = vmatpush3.msra.mxu1 %v1462_v7 }
 0xe0f   :  { %v765_v12 = vpop.f32.mrf.mxu1 }
 0xe10   :  { %v766_v14 = vadd.f32 %v1491_v8, %v765_v12 }
 0xe11   :  { %v1258_v15 = vpop.f32.mrf.mxu1 }
 0xe12   :  { %777 = vrot.lane.b32.xlu0 %v766_v14, %s1393_s10  ;;  %v769_v16 = vadd.f32 %v766_v14, %v168_v1  ;;  %v1123_v14 = vld [vmem:[%s1667_s3 + $0x2] ss:$0 sm:$0xff] }
 0xe14   :  { %v1118_v17 = vmul.f32 -1.442695, %v769_v16 }
 0xe16   :  { %1328 = vpow2.f32 %v1118_v17 }
 0xe23   :  { %v1329_v2 = vpop.eup %1328 }
 0xe24   :  { %v773_v18 = vadd.f32 1.0, %v1329_v2 }
 0xe26   :  { %1330 = vrcp.f32 %v773_v18 }
 0xe33   :  { %v1331_v6 = vpop.eup %1330 }
 0xe34   :  { %v787_v23 = vsub.f32 1.0, %v1331_v6  ;;  %v793_v60 = vmul.f32 %v1331_v6, %v693_v10 }
 0xe84   :  { %v778_v19 = vpop.permute.xlu0 %777 }
 0xe85   :  { %v780_v20 = vmul.f32 %v1331_v6, %v778_v19 }
 0xe87   :  { %782 = vrot.lane.b32.xlu1 %v780_v20, %s1393_s10 }
 0xef9   :  { %v783_v7 = vpop.permute.xlu1 %782 }
 0xefa   :  { %v785_v21 = vadd.f32 %v783_v7, %v168_v1 }
 0xefc   :  { %1332 = vtanh.f32 %v785_v21 }
 0xf09   :  { %v1333_v22 = vpop.eup %1332 }
 0xf0a   :  { %789 = vrot.lane.b32.xlu0 %v1333_v22, %s1394_s13 }
 0xf7c   :  { %v790_v24 = vpop.permute.xlu0 %789 }
 0xf7d   :  { %v792_v25 = vmul.f32 %v790_v24, %v787_v23 }
 0xf7f   :  { %v794_v26 = vadd.f32 %v793_v60, %v792_v25 }
 0xf81   :  { %796 = vrot.lane.b32.xlu1 %v794_v26, %s1394_s13 }
 0xff3   :  { %v797_v27 = vpop.permute.xlu1 %796 }
 0xff4   :  { %1268 = vmatmul.mubr.msk.f32.vlgmr.msra.gmra.mxu0 %vm190_vm3, %v797_v27 }
 0xff5   :  { %1289 = vmatprep.mubr.msk.f32.mxu0 %vm1392_vm0, %v1391_v0 }
0x10b4   :  { %v866_v28 = vpop.f32.mrf.mxu0 }
0x10b5   :  { %v867_v29 = vadd.f32 %v1491_v8, %v866_v28 }
0x10b6   :  { %v1269_v30 = vpop.f32.mrf.mxu0 }
0x10b7   :  { %878 = vrot.lane.b32.xlu0 %v867_v29, %s1393_s10  ;;  %v870_v32 = vadd.f32 %v867_v29, %v173_v31 }
0x10b9   :  { %v1120_v33 = vmul.f32 -1.442695, %v870_v32 }
0x10bb   :  { %1334 = vpow2.f32 %v1120_v33 }
0x10c8   :  { %v1335_v34 = vpop.eup %1334 }
0x10c9   :  { %v874_v35 = vadd.f32 1.0, %v1335_v34 }
0x10cb   :  { %1336 = vrcp.f32 %v874_v35 }
0x10d8   :  { %v1337_v36 = vpop.eup %1336 }
0x10d9   :  { %v888_v42 = vsub.f32 1.0, %v1337_v36  ;;  %v894_v63 = vmul.f32 %v1337_v36, %v794_v26 }
0x1129   :  { %v879_v37 = vpop.permute.xlu0 %878 }
0x112a   :  { %v881_v38 = vmul.f32 %v1337_v36, %v879_v37 }
0x112c   :  { %883 = vrot.lane.b32.xlu1 %v881_v38, %s1393_s10 }
0x119e   :  { %v884_v39 = vpop.permute.xlu1 %883 }
0x119f   :  { %v886_v40 = vadd.f32 %v884_v39, %v173_v31 }
0x11a1   :  { %1338 = vtanh.f32 %v886_v40 }
0x11ae   :  { %v1339_v41 = vpop.eup %1338 }
0x11af   :  { %890 = vrot.lane.b32.xlu0 %v1339_v41, %s1394_s13 }
0x1221   :  { %v891_v43 = vpop.permute.xlu0 %890 }
0x1222   :  { %v893_v44 = vmul.f32 %v891_v43, %v888_v42 }
0x1224   :  { %v895_v45 = vadd.f32 %v894_v63, %v893_v44 }
0x1226   :  { %897 = vrot.lane.b32.xlu1 %v895_v45, %s1394_s13 }
0x1298   :  { %v898_v46 = vpop.permute.xlu1 %897 }
0x1299   :  { %1279 = vmatmul.mubr.msk.f32.vlgmr.msra.gmra.mxu1 %vm190_vm3, %v898_v46 }
0x1359   :  { %v967_v47 = vpop.f32.mrf.mxu1 }
0x135a   :  { %v968_v48 = vadd.f32 %v1491_v8, %v967_v47  ;;  %v1000_v8 = vld [vmem:[%s1668_s4 + $0x18] sm:$0xff]  ;;  %s1395_s4 = smov [#allocation5]  }
0x135b   :  { %v1280_v49 = vpop.f32.mrf.mxu1  ;;  %1282 = vmatpush3.msra.mxu0 %v1000_v8  ;;  %s1088_s2 = sshll.u32 %s1395_s4, 4  ;;  %s1089_s2 = int_to_ptr.vmem [resolvable:$true] %s1088_s2 }
0x135c   :  { %979 = vrot.lane.b32.xlu0 %v968_v48, %s1393_s10  ;;  %v971_v51 = vadd.f32 %v968_v48, %v178_v50  ;;  %1283 = vmatprep.subr.mxu0 %v1391_v0  ;;  %s1366_s9 = scalar_lea.vmem %s1089_s2, 128  ;;  %p1371_p6 = scmp.lt.s32.totalorder %s1089_s2, %s1089_s2 }
0x135d   :  { %1284 = vmatpush3.msra.mxu0 %v999_v13  ;;  %p1367_p5 = scmp.ne.s32.totalorder %s1089_s2, %s1366_s9  ;;  %p1372_p7 = scmp.lt.s32.totalorder %s1366_s9, %s1366_s9 }
0x135e   :  { %v1122_v52 = vmul.f32 -1.442695, %v971_v51  ;;  %1285 = vmatprep.subr.mxu0 %v1391_v0 }
0x135f   :  { %1286 = vmatpush3.msra.mxu0 %v998_v62  ;;  %p1373_p8 = por %p1372_p7, %p1371_p6 }
0x1360   :  { %1340 = vpow2.f32 %v1122_v52  ;;  %1287 = vmatprep.subr.mxu0 %v1391_v0 }
0x1361   :  { %1288 = vmatpush3.msra.mxu0 %v997_v3  ;;  %p1374_p9 = pnand %p1373_p8, %p1367_p5 }
0x136d   :  { %v1341_v53 = vpop.eup %1340 }
0x136e   :  { %v975_v54 = vadd.f32 1.0, %v1341_v53 }
0x1370   :  { %1342 = vrcp.f32 %v975_v54 }
0x137d   :  { %v1343_v55 = vpop.eup %1342 }
0x137e   :  { %v989_v5 = vsub.f32 1.0, %v1343_v55  ;;  %v995_v9 = vmul.f32 %v1343_v55, %v895_v45 }
0x13ce   :  { %v980_v56 = vpop.permute.xlu0 %979 }
0x13cf   :  { %v982_v57 = vmul.f32 %v1343_v55, %v980_v56 }
0x13d1   :  { %984 = vrot.lane.b32.xlu1 %v982_v57, %s1393_s10 }
0x1443   :  { %v985_v58 = vpop.permute.xlu1 %984 }
0x1444   :  { %v987_v59 = vadd.f32 %v985_v58, %v178_v50 }
0x1446   :  { %1344 = vtanh.f32 %v987_v59 }
0x1453   :  { %v1345_v4 = vpop.eup %1344 }
0x1454   :  { %991 = vrot.lane.b32.xlu0 %v1345_v4, %s1394_s13 }
0x14c6   :  { %v992_v61 = vpop.permute.xlu0 %991 }
0x14c7   :  { %v994_v10 = vmul.f32 %v992_v61, %v989_v5 }
0x14c9   :  { %v996_v11 = vadd.f32 %v995_v9, %v994_v10 }
0x14cb   :  { %1007 = vrot.lane.b32.xlu1 %v996_v11, %s1394_s13 }
0x153d   :  { %v1008_v12 = vpop.permute.xlu1 %1007 }
0x153e   :  { %1290 = vmatmul.mubr.msk.f32.vlgmr.msra.gmra.mxu0 %vm190_vm3, %v1008_v12 }
0x15fe   :  { %v1077_v0 = vpop.f32.mrf.mxu0 }
0x15ff   :  { %v1078_v15 = vadd.f32 %v1123_v14, %v1077_v0 }
0x1600   :  { %v1291_v1 = vpop.f32.mrf.mxu0 }
0x1601   :  { %1081 = vst [vmem:[#allocation5] sm:$0xff] %v1078_v15 }
0x1602   :  { %1377 = shalt.err (!%p1374_p9)
}
0x1603   :  { %1091 = dma.vmem_to_hbm [thread:$0]  %s1089_s2, 128, %s1669_s5, [#allocation4]  }
0x1604   :  { %1388 = dma.done.wait [#allocation4], 128  }
0x1605   :  { %1389 = vsyncadd [#allocation4], 4294967168 }
0x1606   :  { %1095 = vsyncpa [#allocation3], 1 }
0x1607   :  { %1096 = vsyncpa [#allocation4], 1 }

</bundles_post_ra>
